<compile_context>
chip_gen: v7x
topology: tpu7x:2x2x1
jax: 0.10.0
libtpu: 0.0.40
codegen_flags: <defaults>
</compile_context>

<pallas_src>
import jax
import jax.numpy as jnp
from jax.experimental import pallas as pl
from jax.experimental.pallas import tpu as pltpu

IN_FEATURES = 3072
HIDDEN = 50
OUT_FEATURES = 10
HIDDEN_PAD = 128   # lane-dense hidden width
OUT_PAD = 128      # lane-dense output width
TM = 512           # batch tile (rows); working set safe across v5e/v6e/v7x


def _snn_kernel(x_ref, w1_ref, b1_ref, w2_ref, b2_ref, out_ref):
    # x_ref : (tm, 3072) f32      w1_ref: (3072, 128) bf16   b1_ref: (1, 128) f32
    # w2_ref: (128, 128) bf16     b2_ref: (1, 128) f32       out_ref: (tm, 128) f32
    # In-kernel f32 -> bf16 cast of the activation tile (VPU, free under DMA bound).
    x = x_ref[...].astype(jnp.bfloat16)
    # Hidden layer: bf16 MXU matmul with f32 accumulation, f32 bias + tanh (EUP).
    h = jnp.dot(x, w1_ref[...], preferred_element_type=jnp.float32)
    h = jnp.tanh(h + b1_ref[...])
    # Output layer: bf16 MXU matmul (f32 acc) + f32 bias; padded columns stay zero.
    o = jnp.dot(h.astype(jnp.bfloat16), w2_ref[...],
                preferred_element_type=jnp.float32)
    out_ref[...] = (o + b2_ref[...]).astype(out_ref.dtype)


def _choose_tm(n):
    """Batch tile: multiple of 8, >=2 grid steps when n > 8, capped at TM."""
    if n <= 8:
        return n                       # full-extent block (legal for any n)
    return int(min(TM, 8 * pl.cdiv(n, 16)))


def snn_forward(x_nchw, w1p, b1p, w2p, b2p):
    """Forward pass.  Takes pre-padded params from pad_params()."""
    n = x_nchw.shape[0]
    # nn.Flatten(): row-major flatten of (C, H, W); free metadata reshape, stays f32.
    x_flat = x_nchw.reshape(n, IN_FEATURES)

    tm = _choose_tm(n)
    grid = (pl.cdiv(n, tm),)

    cost = pl.CostEstimate(
        flops=2 * n * (IN_FEATURES * HIDDEN_PAD + HIDDEN_PAD * OUT_PAD),
        transcendentals=n * HIDDEN_PAD,
        bytes_accessed=(n * IN_FEATURES * 4            # x (f32 in HBM)
                        + IN_FEATURES * HIDDEN_PAD * 2  # w1 (bf16)
                        + HIDDEN_PAD * OUT_PAD * 2      # w2 (bf16)
                        + (HIDDEN_PAD + OUT_PAD) * 4    # biases
                        + n * OUT_PAD * 4),             # output
    )

    out_padded = pl.pallas_call(
        _snn_kernel,
        out_shape=jax.ShapeDtypeStruct((n, OUT_PAD), jnp.float32),
        grid_spec=pl.GridSpec(
            grid=grid,
            in_specs=[
                pl.BlockSpec((tm, IN_FEATURES), lambda i: (i, 0)),          # x: batch-tiled
                pl.BlockSpec((IN_FEATURES, HIDDEN_PAD), lambda i: (0, 0)),  # w1: resident
                pl.BlockSpec((1, HIDDEN_PAD), lambda i: (0, 0)),            # b1: resident
                pl.BlockSpec((HIDDEN_PAD, OUT_PAD), lambda i: (0, 0)),      # w2: resident
                pl.BlockSpec((1, OUT_PAD), lambda i: (0, 0)),               # b2: resident
            ],
            out_specs=pl.BlockSpec((tm, OUT_PAD), lambda i: (i, 0)),
        ),
        compiler_params=pltpu.CompilerParams(
            dimension_semantics=("parallel",),
            vmem_limit_bytes=48 << 20,
        ),
        cost_estimate=cost,
    )(x_flat, w1p, b1p, w2p, b2p)

    # TODO(synk): downstream consumers could take the padded (n, 128) buffer (or a
    # bf16 output) to avoid this extra slice pass over the output in an HBM-bound op.
    return out_padded[:, :OUT_FEATURES]


def pad_params(w1, b1, w2, b2):
    """One-time padding/casting to lane-dense 128-wide, MXU-friendly layouts."""
    w1p = jnp.zeros((IN_FEATURES, HIDDEN_PAD), jnp.bfloat16).at[:, :HIDDEN].set(
        w1.astype(jnp.bfloat16))
    b1p = jnp.zeros((1, HIDDEN_PAD), jnp.float32).at[:, :HIDDEN].set(
        b1.reshape(1, HIDDEN).astype(jnp.float32))
    w2p = jnp.zeros((HIDDEN_PAD, OUT_PAD), jnp.bfloat16).at[:HIDDEN, :OUT_FEATURES].set(
        w2.astype(jnp.bfloat16))
    b2p = jnp.zeros((1, OUT_PAD), jnp.float32).at[:, :OUT_FEATURES].set(
        b2.reshape(1, OUT_FEATURES).astype(jnp.float32))
    return w1p, b1p, w2p, b2p


def init_params(key):
    """PyTorch nn.Linear default init: U(-1/sqrt(fan_in), 1/sqrt(fan_in))."""
    k1, k2, k3, k4 = jax.random.split(key, 4)
    bound1 = 1.0 / jnp.sqrt(jnp.float32(IN_FEATURES))
    bound2 = 1.0 / jnp.sqrt(jnp.float32(HIDDEN))
    # Stored pre-transposed as (in, out) so the kernel does x @ W directly.
    w1 = jax.random.uniform(k1, (IN_FEATURES, HIDDEN), jnp.float32, -bound1, bound1)
    b1 = jax.random.uniform(k2, (1, HIDDEN), jnp.float32, -bound1, bound1)
    w2 = jax.random.uniform(k3, (HIDDEN, OUT_FEATURES), jnp.float32, -bound2, bound2)
    b2 = jax.random.uniform(k4, (1, OUT_FEATURES), jnp.float32, -bound2, bound2)
    return w1, b1, w2, b2


if __name__ == "__main__":
    key = jax.random.PRNGKey(0)
    pkey, xkey = jax.random.split(key)
    w1, b1, w2, b2 = init_params(pkey)
    # Padding/casting done ONCE, outside the per-call forward (hoisted per review).
    params = pad_params(w1, b1, w2, b2)

    # Input consistent with Linear(3072, ...): CIFAR-like NCHW (2, 3, 32, 32).
    x = jax.random.normal(xkey, (2, 3, 32, 32), jnp.float32)

    fwd = jax.jit(snn_forward)
    out = jax.block_until_ready(fwd(x, *params))

    # Pure-JAX reference mirroring the kernel's bf16 rounding of x, W1, h and W2.
    hp = jax.lax.Precision.HIGHEST
    xb = x.reshape(2, IN_FEATURES).astype(jnp.bfloat16).astype(jnp.float32)
    w1b = w1.astype(jnp.bfloat16).astype(jnp.float32)
    h_ref = jnp.tanh(jnp.dot(xb, w1b, precision=hp) + b1)
    w2b = w2.astype(jnp.bfloat16).astype(jnp.float32)
    ref = jnp.dot(h_ref.astype(jnp.bfloat16).astype(jnp.float32), w2b, precision=hp) + b2

    assert out.shape == (2, OUT_FEATURES)
    assert jnp.allclose(out, ref, atol=5e-3, rtol=5e-3), float(jnp.max(jnp.abs(out - ref)))

    print("KERNEL_OK")
</pallas_src>

<mosaic_0001>
module attributes {stable_mosaic.version = 11 : i64} {
  func.func @_snn_kernel(%arg0: i32, %arg1: memref<2x3072xf32, #tpu.memory_space<vmem>>, %arg2: memref<3072x128xbf16, #tpu.memory_space<vmem>>, %arg3: memref<1x128xf32, #tpu.memory_space<vmem>>, %arg4: memref<128x128xbf16, #tpu.memory_space<vmem>>, %arg5: memref<1x128xf32, #tpu.memory_space<vmem>>, %arg6: memref<2x128xf32, #tpu.memory_space<vmem>>) attributes {dimension_semantics = [#tpu.dimension_semantics<parallel>], iteration_bounds = array<i64: 1>, scalar_prefetch = 0 : i64, scratch_operands = 0 : i64, tpu.core_type = #tpu.core_type<tc>, window_params = [{transform_indices = @transform_0, window_bounds = array<i64: 2, 3072>}, {pipeline_mode = #tpu.pipeline_mode<synchronous>, transform_indices = @transform_1, window_bounds = array<i64: 3072, 128>}, {pipeline_mode = #tpu.pipeline_mode<synchronous>, transform_indices = @transform_2, window_bounds = array<i64: 1, 128>}, {pipeline_mode = #tpu.pipeline_mode<synchronous>, transform_indices = @transform_3, window_bounds = array<i64: 128, 128>}, {pipeline_mode = #tpu.pipeline_mode<synchronous>, transform_indices = @transform_4, window_bounds = array<i64: 1, 128>}, {transform_indices = @transform_5, window_bounds = array<i64: 2, 128>}]} {
    %c0 = arith.constant 0 : index
    %c0_0 = arith.constant 0 : index
    %0 = vector.load %arg1[%c0, %c0_0] : memref<2x3072xf32, #tpu.memory_space<vmem>>, vector<2x3072xf32>
    %1 = arith.truncf %0 : vector<2x3072xf32> to vector<2x3072xbf16>
    %c0_1 = arith.constant 0 : index
    %c0_2 = arith.constant 0 : index
    %2 = vector.load %arg2[%c0_1, %c0_2] : memref<3072x128xbf16, #tpu.memory_space<vmem>>, vector<3072x128xbf16>
    %cst = arith.constant dense<0.000000e+00> : vector<2x128xf32>
    %3 = tpu.matmul %1, %2, %cst {dimension_numbers = #tpu.dot_dimension_numbers<[1], [0], [0], [1], [0, 0, 1, 1], [], []>} : vector<2x3072xbf16>, vector<3072x128xbf16>, vector<2x128xf32> -> vector<2x128xf32>
    %c0_3 = arith.constant 0 : index
    %c0_4 = arith.constant 0 : index
    %4 = vector.load %arg3[%c0_3, %c0_4] : memref<1x128xf32, #tpu.memory_space<vmem>>, vector<1x128xf32>
    %5 = vector.broadcast %4 : vector<1x128xf32> to vector<2x128xf32>
    %6 = arith.addf %3, %5 : vector<2x128xf32>
    %7 = math.tanh %6 : vector<2x128xf32>
    %8 = arith.truncf %7 : vector<2x128xf32> to vector<2x128xbf16>
    %c0_5 = arith.constant 0 : index
    %c0_6 = arith.constant 0 : index
    %9 = vector.load %arg4[%c0_5, %c0_6] : memref<128x128xbf16, #tpu.memory_space<vmem>>, vector<128x128xbf16>
    %cst_7 = arith.constant dense<0.000000e+00> : vector<2x128xf32>
    %10 = tpu.matmul %8, %9, %cst_7 {dimension_numbers = #tpu.dot_dimension_numbers<[1], [0], [0], [1], [0, 0, 1, 1], [], []>} : vector<2x128xbf16>, vector<128x128xbf16>, vector<2x128xf32> -> vector<2x128xf32>
    %c0_8 = arith.constant 0 : index
    %c0_9 = arith.constant 0 : index
    %11 = vector.load %arg5[%c0_8, %c0_9] : memref<1x128xf32, #tpu.memory_space<vmem>>, vector<1x128xf32>
    %12 = vector.broadcast %11 : vector<1x128xf32> to vector<2x128xf32>
    %13 = arith.addf %10, %12 : vector<2x128xf32>
    %c0_10 = arith.constant 0 : index
    %c0_11 = arith.constant 0 : index
    %14 = vector.load %arg6[%c0_10, %c0_11] : memref<2x128xf32, #tpu.memory_space<vmem>>, vector<2x128xf32>
    tpu.vector_store %arg6[%c0_10, %c0_11], %13 {strides = array<i32>} : memref<2x128xf32, #tpu.memory_space<vmem>>, vector<2x128xf32>,
    return
  }
  func.func @transform_0(%arg0: i32) -> (i32, i32) {
    %c0_i32 = arith.constant 0 : i32
    %c0_i32_0 = arith.constant 0 : i32
    return %arg0, %c0_i32 : i32, i32
  }
  func.func @transform_1(%arg0: i32) -> (i32, i32) {
    %c0_i32 = arith.constant 0 : i32
    %c0_i32_0 = arith.constant 0 : i32
    %c0_i32_1 = arith.constant 0 : i32
    return %c0_i32, %c0_i32_0 : i32, i32
  }
  func.func @transform_2(%arg0: i32) -> (i32, i32) {
    %c0_i32 = arith.constant 0 : i32
    %c0_i32_0 = arith.constant 0 : i32
    %c0_i32_1 = arith.constant 0 : i32
    return %c0_i32, %c0_i32_0 : i32, i32
  }
  func.func @transform_3(%arg0: i32) -> (i32, i32) {
    %c0_i32 = arith.constant 0 : i32
    %c0_i32_0 = arith.constant 0 : i32
    %c0_i32_1 = arith.constant 0 : i32
    return %c0_i32, %c0_i32_0 : i32, i32
  }
  func.func @transform_4(%arg0: i32) -> (i32, i32) {
    %c0_i32 = arith.constant 0 : i32
    %c0_i32_0 = arith.constant 0 : i32
    %c0_i32_1 = arith.constant 0 : i32
    return %c0_i32, %c0_i32_0 : i32, i32
  }
  func.func @transform_5(%arg0: i32) -> (i32, i32) {
    %c0_i32 = arith.constant 0 : i32
    %c0_i32_0 = arith.constant 0 : i32
    return %arg0, %c0_i32 : i32, i32
  }
}

</mosaic_0001>

<bundles_post_ra>
// kernel: snn_forward.1
= control target key start
LH: loop header
LB: loop body
LE: loop exit
PB: predicated region body
PF: predicated region fallthrough
CT: control target
= control target key end

     0   :  { %10 = vsyncpa [#allocation3], 0  ;;  %s3231_s0 = inlined_call_operand.vmem [shape: f32[2,3072], index: 0, kind: input, shape index: {}]   ;;  %s3232_s1 = inlined_call_operand.hbm [shape: bf16[3072,128], index: 1, kind: input, shape index: {}]   ;;  %s3233_s2 = inlined_call_operand.vmem [shape: f32[1,128], index: 2, kind: input, shape index: {}]   ;;  %s3234_s3 = inlined_call_operand.vmem [shape: bf16[128,128], index: 3, kind: input, shape index: {}]   ;;  %s3235_s4 = inlined_call_operand.vmem [shape: f32[1,128], index: 4, kind: input, shape index: {}]   ;;  %s3236_s5 = inlined_call_operand.hbm [shape: f32[2,128], index: 5, kind: output, shape index: {}]  }
   0x1   :  { %11 = vsyncpa [#allocation4], 0  ;;  %s3108_s18 = smov [#allocation2]   ;;  %s3060_s22 = scalar_lea.hbm %s3232_s1, 24576 }
   0x2   :  { %s19_s19 = sshll.u32 %s3108_s18, 4  ;;  %p3061_p0 = scmp.ne.s32.totalorder %s3232_s1, %s3060_s22  ;;  %s20_s19 = int_to_ptr.vmem [resolvable:$true] %s19_s19 }
   0x3   :  { %p3064_p1 = scmp.lt.u32.totalorder %s3060_s22, %s3232_s1 }
   0x5   :  { %p3066_p2 = pnand %p3064_p1, %p3061_p0 }
   0x7   :  { %3069 = shalt.err (!%p3066_p2)
}
   0x8   :  { %s3070_s27 = scalar_lea.vmem %s20_s19, 24576  ;;  %p3075_p4 = scmp.lt.s32.totalorder %s20_s19, %s20_s19 }
   0x9   :  { %p3071_p3 = scmp.ne.s32.totalorder %s20_s19, %s3070_s27  ;;  %p3076_p5 = scmp.lt.s32.totalorder %s3070_s27, %s3070_s27 }
   0xb   :  { %p3077_p6 = por %p3076_p5, %p3075_p4 }
   0xd   :  { %p3078_p7 = pnand %p3077_p6, %p3071_p3 }
   0xf   :  { %3081 = shalt.err (!%p3078_p7)
}
  0x10   :  { %s3109_s28 = smov 64   ;;  %s3110_s29 = smov 4  }
  0x11   :  { %25 = dma.hbm_to_vmem [thread:$0]  %s3232_s1, 24576, %s20_s19, [#allocation3], %s3109_s28, %s3109_s28, %s3110_s29  }
  0x12   :  { %3104 = dma.done.wait [#allocation3], 24576  }
  0x13   :  { %3105 = vsyncadd [#allocation3], 4294942720  ;;  %v2852_v0 = vld [vmem:[#allocation2 + $0x40] sm:$0xff]   ;;  %v2856_v4 = vld [vmem:[#allocation2 + $0x48] sm:$0xff]   ;;  %v3111_v22 = vmov 1983009808   ;;  %v52_v24 = vlaneseq }
  0x14   :  { %v2853_v1 = vld [vmem:[#allocation2 + $0xc0] sm:$0xff]   ;;  %2552 = vmatprep.subr.bf16.mxu0 %v2852_v0  ;;  %v2857_v5 = vld [vmem:[#allocation2 + $0xc8] sm:$0xff]   ;;  %v2860_v8 = vld [vmem:[#allocation2 + $0x50] sm:$0xff]   ;;  %v50_v23 = vunpack.c.l.s4 %v3111_v22  ;;  %vm3113_vm0 = vmmov 0   ;;  %s3114_s9 = smov [#allocation5]  }
  0x15   :  { %v2854_v2 = vld [vmem:[#allocation2] sm:$0xff]   ;;  %2574 = vmatprep.subr.bf16.mxu1 %v2853_v1  ;;  %v2858_v6 = vld [vmem:[#allocation2 + $0x8] sm:$0xff]   ;;  %v2861_v9 = vld [vmem:[#allocation2 + $0xd0] sm:$0xff]   ;;  %v53_v30 = vshrl.u32 %v52_v24, 7  ;;  %s2341_s10 = sshll.u32 %s3114_s9, 4  ;;  %s2342_s10 = int_to_ptr.vmem [resolvable:$true] %s2341_s10 }
  0x16   :  { %v2855_v3 = vld [vmem:[#allocation2 + $0x80] sm:$0xff]   ;;  %2553 = vmatpush3.bf16.msra.mxu0 %v2854_v2  ;;  %v2859_v7 = vld [vmem:[#allocation2 + $0x88] sm:$0xff]   ;;  %v2862_v10 = vld [vmem:[#allocation2 + $0x10] sm:$0xff]   ;;  %v51_v29 = vunpack.c.0.s8 %v50_v23  ;;  %s3082_s11 = scalar_lea.vmem %s2342_s10, 32  ;;  %p3087_p9 = scmp.lt.s32.totalorder %s2342_s10, %s2342_s10 }
  0x17   :  { %2575 = vmatpush3.bf16.msra.mxu1 %v2855_v3  ;;  %2554 = vmatprep.subr.bf16.mxu0 %v2856_v4  ;;  %v2863_v11 = vld [vmem:[#allocation2 + $0x90] sm:$0xff]   ;;  %v2864_v12 = vld [vmem:[#allocation2 + $0x58] sm:$0xff]   ;;  %v2868_v16 = vld [vmem:[#allocation2 + $0x60] sm:$0xff]   ;;  %p3083_p8 = scmp.ne.s32.totalorder %s2342_s10, %s3082_s11  ;;  %p3088_p10 = scmp.lt.s32.totalorder %s3082_s11, %s3082_s11 }
  0x18   :  { %2576 = vmatprep.subr.bf16.mxu1 %v2857_v5  ;;  %v2865_v13 = vld [vmem:[#allocation2 + $0xd8] sm:$0xff]   ;;  %v2869_v17 = vld [vmem:[#allocation2 + $0xe0] sm:$0xff]   ;;  %v2872_v20 = vld [vmem:[#allocation2 + $0x68] sm:$0xff]   ;;  %v3157_v35 = vsub.s32 %v51_v29, %v53_v30 }
  0x19   :  { %v2866_v14 = vld [vmem:[#allocation2 + $0x18] sm:$0xff]   ;;  %v2870_v18 = vld [vmem:[#allocation2 + $0x20] sm:$0xff]   ;;  %v2873_v21 = vld [vmem:[#allocation2 + $0xe8] sm:$0xff]   ;;  %p3089_p11 = por %p3088_p10, %p3087_p9 }
  0x1a   :  { %2555 = vmatpush3.bf16.msra.mxu0 %v2858_v6  ;;  %v2867_v15 = vld [vmem:[#allocation2 + $0x98] sm:$0xff]   ;;  %v2871_v19 = vld [vmem:[#allocation2 + $0xa0] sm:$0xff]   ;;  %v2874_v25 = vld [vmem:[#allocation2 + $0x28] sm:$0xff]  }
  0x1b   :  { %2577 = vmatpush3.bf16.msra.mxu1 %v2859_v7  ;;  %2556 = vmatprep.subr.bf16.mxu0 %v2860_v8  ;;  %v2875_v26 = vld [vmem:[#allocation2 + $0xa8] sm:$0xff]   ;;  %v2876_v27 = vld [vmem:[#allocation2 + $0x70] sm:$0xff]   ;;  %v2880_v33 = vld [vmem:[#allocation2 + $0x78] sm:$0xff]   ;;  %p3090_p12 = pnand %p3089_p11, %p3083_p8 }
  0x1c   :  { %2578 = vmatprep.subr.bf16.mxu1 %v2861_v9  ;;  %v2877_v28 = vld [vmem:[#allocation2 + $0xf0] sm:$0xff]   ;;  %v2881_v34 = vld [vmem:[#allocation2 + $0xf8] sm:$0xff]   ;;  %v2885_v41 = vld [vmem:[#allocation2 + $0x140] sm:$0xff]  }
  0x1d   :  { %v2878_v31 = vld [vmem:[#allocation2 + $0x30] sm:$0xff]   ;;  %v2882_v36 = vld [vmem:[#allocation2 + $0x38] sm:$0xff]   ;;  %v2886_v42 = vld [vmem:[#allocation2 + $0x1c0] sm:$0xff]  }
  0x1e   :  { %2557 = vmatpush3.bf16.msra.mxu0 %v2862_v10  ;;  %v2879_v32 = vld [vmem:[#allocation2 + $0xb0] sm:$0xff]   ;;  %v2883_v37 = vld [vmem:[#allocation2 + $0xb8] sm:$0xff]   ;;  %v2887_v46 = vld [vmem:[#allocation2 + $0x100] sm:$0xff]  }
  0x1f   :  { %2579 = vmatpush3.bf16.msra.mxu1 %v2863_v11  ;;  %2558 = vmatprep.subr.bf16.mxu0 %v2864_v12  ;;  %v36_v38 = vld [vmem:[%s3231_s0] sm:$0xff]  ;;  %v2888_v49 = vld [vmem:[#allocation2 + $0x180] sm:$0xff]   ;;  %v2889_v51 = vld [vmem:[#allocation2 + $0x148] sm:$0xff]  }
  0x20   :  { %2580 = vmatprep.subr.bf16.mxu1 %v2865_v13  ;;  %v55_v39 = vrot.slane %v36_v38, %v3157_v35  ;;  %v48_v40 = vcombine.high %v36_v38, %v36_v38  ;;  %v2890_v53 = vld [vmem:[#allocation2 + $0x1c8] sm:$0xff]   ;;  %v2893_v56 = vld [vmem:[#allocation2 + $0x150] sm:$0xff]   ;;  %v2897_v60 = vld [vmem:[#allocation2 + $0x158] sm:$0xff]  }
  0x21   :  { %v2891_v54 = vld [vmem:[#allocation2 + $0x108] sm:$0xff]   ;;  %v2894_v57 = vld [vmem:[#allocation2 + $0x1d0] sm:$0xff]   ;;  %v2898_v61 = vld [vmem:[#allocation2 + $0x1d8] sm:$0xff]  }
  0x22   :  { %2559 = vmatpush3.bf16.msra.mxu0 %v2866_v14  ;;  %v63_v43 = vcombine.high %v55_v39, %v55_v39  ;;  %v62_v44 = vrot.slane %v48_v40, %v3157_v35  ;;  %v174_v45 = vpack.c.bf16 %v55_v39, %v55_v39  ;;  %v2892_v55 = vld [vmem:[#allocation2 + $0x188] sm:$0xff]   ;;  %v2895_v58 = vld [vmem:[#allocation2 + $0x110] sm:$0xff]   ;;  %v2899_v62 = vld [vmem:[#allocation2 + $0x118] sm:$0xff]  }
  0x23   :  { %2581 = vmatpush3.bf16.msra.mxu1 %v2867_v15  ;;  %2560 = vmatprep.subr.bf16.mxu0 %v2868_v16  ;;  %v2896_v59 = vld [vmem:[#allocation2 + $0x190] sm:$0xff]   ;;  %v2900_v63 = vld [vmem:[#allocation2 + $0x198] sm:$0xff]   ;;  %v2901_v0 = vld [vmem:[#allocation2 + $0x160] sm:$0xff]  }
  0x24   :  { %2582 = vmatprep.subr.bf16.mxu1 %v2869_v17  ;;  %v175_v47 = vpack.c.bf16 %v63_v43, %v63_v43  ;;  %v64_v48 = vcombine.high %v62_v44, %v62_v44  ;;  %v176_v50 = vpack.c.bf16 %v62_v44, %v62_v44  ;;  %v2902_v1 = vld [vmem:[#allocation2 + $0x1e0] sm:$0xff]   ;;  %v2905_v4 = vld [vmem:[#allocation2 + $0x168] sm:$0xff]   ;;  %v2909_v8 = vld [vmem:[#allocation2 + $0x170] sm:$0xff]  }
  0x25   :  { %v2903_v2 = vld [vmem:[#allocation2 + $0x120] sm:$0xff]   ;;  %v2906_v5 = vld [vmem:[#allocation2 + $0x1e8] sm:$0xff]   ;;  %v2910_v9 = vld [vmem:[#allocation2 + $0x1f0] sm:$0xff]  }
  0x26   :  { %2561 = vmatpush3.bf16.msra.mxu0 %v2870_v18  ;;  %1773 = vmatprep.mubr.bf16.mxu0 %v175_v47  ;;  %v177_v52 = vpack.c.bf16 %v64_v48, %v64_v48  ;;  %v2904_v3 = vld [vmem:[#allocation2 + $0x1a0] sm:$0xff]   ;;  %v2907_v6 = vld [vmem:[#allocation2 + $0x128] sm:$0xff]   ;;  %v2911_v10 = vld [vmem:[#allocation2 + $0x130] sm:$0xff]  }
  0x27   :  { %2583 = vmatpush3.bf16.msra.mxu1 %v2871_v19  ;;  %2562 = vmatprep.subr.bf16.mxu0 %v2872_v20  ;;  %v2908_v7 = vld [vmem:[#allocation2 + $0x1a8] sm:$0xff]   ;;  %v2912_v11 = vld [vmem:[#allocation2 + $0x1b0] sm:$0xff]   ;;  %v2913_v12 = vld [vmem:[#allocation2 + $0x178] sm:$0xff]  }
  0x28   :  { %2584 = vmatprep.subr.bf16.mxu1 %v2873_v21  ;;  %1813 = vmatprep.mubr.bf16.mxu1 %v177_v52  ;;  %v2914_v13 = vld [vmem:[#allocation2 + $0x1f8] sm:$0xff]   ;;  %v2918_v19 = vld [vmem:[#allocation2 + $0x240] sm:$0xff]   ;;  %v2922_v29 = vld [vmem:[#allocation2 + $0x248] sm:$0xff]  }
  0x29   :  { %v2915_v14 = vld [vmem:[#allocation2 + $0x138] sm:$0xff]   ;;  %v2919_v22 = vld [vmem:[#allocation2 + $0x2c0] sm:$0xff]   ;;  %v2929_v38 = vld [vmem:[#allocation2 + $0x290] sm:$0xff]  }
  0x2a   :  { %2563 = vmatpush3.bf16.msra.mxu0 %v2874_v25  ;;  %v37_v15 = vld [vmem:[%s3231_s0 + $0x8] sm:$0xff]  ;;  %v2920_v24 = vld [vmem:[#allocation2 + $0x200] sm:$0xff]   ;;  %v2938_v47 = vld [vmem:[#allocation2 + $0x268] sm:$0xff]  }
  0x2b   :  { %2585 = vmatpush3.bf16.msra.mxu1 %v2875_v26  ;;  %2564 = vmatprep.subr.bf16.mxu0 %v2876_v27  ;;  %v2916_v16 = vld [vmem:[#allocation2 + $0x1b8] sm:$0xff]   ;;  %v72_v17 = vrot.slane %v37_v15, %v3157_v35  ;;  %v65_v18 = vcombine.high %v37_v15, %v37_v15  ;;  %v2921_v27 = vld [vmem:[#allocation2 + $0x280] sm:$0xff]   ;;  %v2939_v48 = vld [vmem:[#allocation2 + $0x2e8] sm:$0xff]  }
  0x2c   :  { %2586 = vmatprep.subr.bf16.mxu1 %v2877_v28  ;;  %v2930_v39 = vld [vmem:[#allocation2 + $0x258] sm:$0xff]   ;;  %v2934_v43 = vld [vmem:[#allocation2 + $0x260] sm:$0xff]   ;;  %v2943_v52 = vld [vmem:[#allocation2 + $0x2f0] sm:$0xff]  }
  0x2d   :  { %v80_v20 = vcombine.high %v72_v17, %v72_v17  ;;  %v79_v21 = vrot.slane %v65_v18, %v3157_v35  ;;  %v178_v23 = vpack.c.bf16 %v72_v17, %v72_v17  ;;  %v2931_v40 = vld [vmem:[#allocation2 + $0x2d8] sm:$0xff]   ;;  %v2935_v44 = vld [vmem:[#allocation2 + $0x2e0] sm:$0xff]   ;;  %v2961_v15 = vld [vmem:[#allocation2 + $0x310] sm:$0xff]  }
  0x2e   :  { %2565 = vmatpush3.bf16.msra.mxu0 %v2878_v31  ;;  %v2923_v31 = vld [vmem:[#allocation2 + $0x2c8] sm:$0xff]   ;;  %v2963_v17 = vld [vmem:[#allocation2 + $0x358] sm:$0xff]  }
  0x2f   :  { %2587 = vmatpush3.bf16.msra.mxu1 %v2879_v32  ;;  %2566 = vmatprep.subr.bf16.mxu0 %v2880_v33  ;;  %v179_v25 = vpack.c.bf16 %v80_v20, %v80_v20  ;;  %v81_v26 = vcombine.high %v79_v21, %v79_v21  ;;  %v180_v28 = vpack.c.bf16 %v79_v21, %v79_v21  ;;  %v2924_v32 = vld [vmem:[#allocation2 + $0x208] sm:$0xff]   ;;  %v2964_v18 = vld [vmem:[#allocation2 + $0x3d8] sm:$0xff]   ;;  %v2967_v21 = vld [vmem:[#allocation2 + $0x360] sm:$0xff]  }
  0x30   :  { %2588 = vmatprep.subr.bf16.mxu1 %v2881_v34  ;;  %v2925_v33 = vld [vmem:[#allocation2 + $0x288] sm:$0xff]   ;;  %v2926_v34 = vld [vmem:[#allocation2 + $0x250] sm:$0xff]   ;;  %v2966_v20 = vld [vmem:[#allocation2 + $0x398] sm:$0xff]  }
  0x31   :  { %v181_v30 = vpack.c.bf16 %v81_v26, %v81_v26  ;;  %v2972_v26 = vld [vmem:[#allocation2 + $0x3e8] sm:$0xff]  }
  0x32   :  { %2567 = vmatpush3.bf16.msra.mxu0 %v2882_v36  ;;  %v2927_v36 = vld [vmem:[#allocation2 + $0x2d0] sm:$0xff]  }
  0x33   :  { %2589 = vmatpush3.bf16.msra.mxu1 %v2883_v37  ;;  %2596 = vmatprep.subr.bf16.mxu0 %v2885_v41  ;;  %v2928_v37 = vld [vmem:[#allocation2 + $0x210] sm:$0xff]   ;;  %v2932_v41 = vld [vmem:[#allocation2 + $0x218] sm:$0xff]  }
  0x34   :  { %2618 = vmatprep.subr.bf16.mxu1 %v2886_v42  ;;  %v2933_v42 = vld [vmem:[#allocation2 + $0x298] sm:$0xff]  }
  0x35   :  { %1774 = vmatmul.mubr.bf16.vlgmr.msra.gmra.mrb[0].mxu0 %v174_v45  ;;  %v2936_v45 = vld [vmem:[#allocation2 + $0x220] sm:$0xff]  }
  0x36   :  { %2597 = vmatpush3.bf16.msra.mxu0 %v2887_v46  ;;  %1814 = vmatmul.mubr.bf16.vlgmr.msra.gmra.mrb[0].mxu1 %v176_v50  ;;  %v2937_v46 = vld [vmem:[#allocation2 + $0x2a0] sm:$0xff]   ;;  %v2941_v50 = vld [vmem:[#allocation2 + $0x2a8] sm:$0xff]  }
  0x37   :  { %2598 = vmatprep.subr.bf16.mxu0 %v2889_v51  ;;  %2619 = vmatpush3.bf16.msra.mxu1 %v2888_v49  ;;  %v2940_v49 = vld [vmem:[#allocation2 + $0x228] sm:$0xff]   ;;  %v2942_v51 = vld [vmem:[#allocation2 + $0x270] sm:$0xff]  }
  0x38   :  { %2620 = vmatprep.subr.bf16.mxu1 %v2890_v53  ;;  %1853 = vmatprep.mubr.bf16.mxu0 %v179_v25  ;;  %v2944_v53 = vld [vmem:[#allocation2 + $0x230] sm:$0xff]   ;;  %v2971_v25 = vld [vmem:[#allocation2 + $0x368] sm:$0xff]  }
  0x39   :  { %1893 = vmatprep.mubr.bf16.mxu1 %v181_v30  ;;  %v2976_v30 = vld [vmem:[#allocation2 + $0x3f0] sm:$0xff]  }
  0x3a   :  { %2599 = vmatpush3.bf16.msra.mxu0 %v2891_v54  ;;  %v2945_v54 = vld [vmem:[#allocation2 + $0x2b0] sm:$0xff]  }
  0x3b   :  { %2600 = vmatprep.subr.bf16.mxu0 %v2893_v56  ;;  %2621 = vmatpush3.bf16.msra.mxu1 %v2892_v55  ;;  %v2946_v55 = vld [vmem:[#allocation2 + $0x278] sm:$0xff]  }
  0x3c   :  { %2622 = vmatprep.subr.bf16.mxu1 %v2894_v57  ;;  %v2947_v56 = vld [vmem:[#allocation2 + $0x2f8] sm:$0xff]  }
  0x3d   :  { %v2948_v57 = vld [vmem:[#allocation2 + $0x238] sm:$0xff]  }
  0x3e   :  { %2601 = vmatpush3.bf16.msra.mxu0 %v2895_v58  ;;  %v38_v58 = vld [vmem:[%s3231_s0 + $0x10] sm:$0xff] }
  0x3f   :  { %2602 = vmatprep.subr.bf16.mxu0 %v2897_v60  ;;  %2623 = vmatpush3.bf16.msra.mxu1 %v2896_v59  ;;  %v2949_v59 = vld [vmem:[#allocation2 + $0x2b8] sm:$0xff]   ;;  %v89_v60 = vrot.slane %v38_v58, %v3157_v35 }
  0x40   :  { %2624 = vmatprep.subr.bf16.mxu1 %v2898_v61  ;;  %v82_v61 = vcombine.high %v38_v58, %v38_v58  ;;  %v2994_v58 = vld [vmem:[#allocation2 + $0x410] sm:$0xff]  }
  0x42   :  { %2603 = vmatpush3.bf16.msra.mxu0 %v2899_v62  ;;  %v2951_v62 = vld [vmem:[#allocation2 + $0x340] sm:$0xff]  }
  0x43   :  { %2604 = vmatprep.subr.bf16.mxu0 %v2901_v0  ;;  %2625 = vmatpush3.bf16.msra.mxu1 %v2900_v63  ;;  %v97_v63 = vcombine.high %v89_v60, %v89_v60  ;;  %v96_v0 = vrot.slane %v82_v61, %v3157_v35  ;;  %v2997_v61 = vld [vmem:[#allocation2 + $0x4d8] sm:$0xff]  }
  0x44   :  { %2626 = vmatprep.subr.bf16.mxu1 %v2902_v1  ;;  %v2952_v1 = vld [vmem:[#allocation2 + $0x3c0] sm:$0xff]  }
  0x46   :  { %2605 = vmatpush3.bf16.msra.mxu0 %v2903_v2  ;;  %v182_v2 = vpack.c.bf16 %v89_v60, %v89_v60  ;;  %v2996_v60 = vld [vmem:[#allocation2 + $0x458] sm:$0xff]  }
  0x47   :  { %2606 = vmatprep.subr.bf16.mxu0 %v2905_v4  ;;  %2627 = vmatpush3.bf16.msra.mxu1 %v2904_v3  ;;  %v2953_v3 = vld [vmem:[#allocation2 + $0x300] sm:$0xff]   ;;  %v183_v4 = vpack.c.bf16 %v97_v63, %v97_v63  ;;  %v2999_v63 = vld [vmem:[#allocation2 + $0x498] sm:$0xff]  }
  0x48   :  { %2628 = vmatprep.subr.bf16.mxu1 %v2906_v5  ;;  %v98_v5 = vcombine.high %v96_v0, %v96_v0 }
  0x4a   :  { %2607 = vmatpush3.bf16.msra.mxu0 %v2907_v6  ;;  %v2954_v6 = vld [vmem:[#allocation2 + $0x380] sm:$0xff]  }
  0x4b   :  { %2608 = vmatprep.subr.bf16.mxu0 %v2909_v8  ;;  %2629 = vmatpush3.bf16.msra.mxu1 %v2908_v7  ;;  %v184_v7 = vpack.c.bf16 %v96_v0, %v96_v0  ;;  %v2955_v8 = vld [vmem:[#allocation2 + $0x348] sm:$0xff]   ;;  %v3000_v0 = vld [vmem:[#allocation2 + $0x460] sm:$0xff]  }
  0x4c   :  { %2630 = vmatprep.subr.bf16.mxu1 %v2910_v9  ;;  %v185_v9 = vpack.c.bf16 %v98_v5, %v98_v5  ;;  %v3005_v5 = vld [vmem:[#allocation2 + $0x4e8] sm:$0xff]  }
  0x4e   :  { %2609 = vmatpush3.bf16.msra.mxu0 %v2911_v10  ;;  %v2956_v10 = vld [vmem:[#allocation2 + $0x3c8] sm:$0xff]  }
  0x4f   :  { %2610 = vmatprep.subr.bf16.mxu0 %v2913_v12  ;;  %2631 = vmatpush3.bf16.msra.mxu1 %v2912_v11  ;;  %v2957_v11 = vld [vmem:[#allocation2 + $0x308] sm:$0xff]  }
  0x50   :  { %2632 = vmatprep.subr.bf16.mxu1 %v2914_v13  ;;  %v2958_v12 = vld [vmem:[#allocation2 + $0x388] sm:$0xff]   ;;  %v2959_v13 = vld [vmem:[#allocation2 + $0x350] sm:$0xff]  }
  0x52   :  { %2611 = vmatpush3.bf16.msra.mxu0 %v2915_v14  ;;  %v2960_v14 = vld [vmem:[#allocation2 + $0x3d0] sm:$0xff]  }
  0x53   :  { %2640 = vmatprep.subr.bf16.mxu0 %v2918_v19  ;;  %2633 = vmatpush3.bf16.msra.mxu1 %v2916_v16  ;;  %v2962_v16 = vld [vmem:[#allocation2 + $0x390] sm:$0xff]   ;;  %v2965_v19 = vld [vmem:[#allocation2 + $0x318] sm:$0xff]  }
  0x54   :  { %2662 = vmatprep.subr.bf16.mxu1 %v2919_v22  ;;  %v2968_v22 = vld [vmem:[#allocation2 + $0x3e0] sm:$0xff]  }
  0x55   :  { %1854 = vmatmul.mubr.bf16.vlgmr.msra.gmra.mrb[4].mxu0 %v178_v23  ;;  %v2969_v23 = vld [vmem:[#allocation2 + $0x320] sm:$0xff]  }
  0x56   :  { %2641 = vmatpush3.bf16.msra.mxu0 %v2920_v24  ;;  %1894 = vmatmul.mubr.bf16.vlgmr.msra.gmra.mrb[4].mxu1 %v180_v28  ;;  %v2970_v24 = vld [vmem:[#allocation2 + $0x3a0] sm:$0xff]   ;;  %v2974_v28 = vld [vmem:[#allocation2 + $0x3a8] sm:$0xff]  }
  0x57   :  { %2642 = vmatprep.subr.bf16.mxu0 %v2922_v29  ;;  %2663 = vmatpush3.bf16.msra.mxu1 %v2921_v27  ;;  %v2973_v27 = vld [vmem:[#allocation2 + $0x328] sm:$0xff]   ;;  %v2975_v29 = vld [vmem:[#allocation2 + $0x370] sm:$0xff]  }
  0x58   :  { %2664 = vmatprep.subr.bf16.mxu1 %v2923_v31  ;;  %1933 = vmatprep.mubr.bf16.mxu0 %v183_v4  ;;  %v2977_v31 = vld [vmem:[#allocation2 + $0x330] sm:$0xff]   ;;  %v3004_v4 = vld [vmem:[#allocation2 + $0x468] sm:$0xff]  }
  0x59   :  { %1973 = vmatprep.mubr.bf16.mxu1 %v185_v9  ;;  %v3009_v9 = vld [vmem:[#allocation2 + $0x4f0] sm:$0xff]  }
  0x5a   :  { %2643 = vmatpush3.bf16.msra.mxu0 %v2924_v32  ;;  %v2978_v32 = vld [vmem:[#allocation2 + $0x3b0] sm:$0xff]  }
  0x5b   :  { %2644 = vmatprep.subr.bf16.mxu0 %v2926_v34  ;;  %2665 = vmatpush3.bf16.msra.mxu1 %v2925_v33  ;;  %v2979_v33 = vld [vmem:[#allocation2 + $0x378] sm:$0xff]  }
  0x5c   :  { %2666 = vmatprep.subr.bf16.mxu1 %v2927_v36  ;;  %v2980_v34 = vld [vmem:[#allocation2 + $0x3f8] sm:$0xff]  }
  0x5d   :  { %v2981_v36 = vld [vmem:[#allocation2 + $0x338] sm:$0xff]  }
  0x5e   :  { %2645 = vmatpush3.bf16.msra.mxu0 %v2928_v37  ;;  %v39_v37 = vld [vmem:[%s3231_s0 + $0x18] sm:$0xff] }
  0x5f   :  { %2646 = vmatprep.subr.bf16.mxu0 %v2930_v39  ;;  %2667 = vmatpush3.bf16.msra.mxu1 %v2929_v38  ;;  %v106_v38 = vrot.slane %v39_v37, %v3157_v35  ;;  %v99_v39 = vcombine.high %v39_v37, %v39_v37  ;;  %v3027_v37 = vld [vmem:[#allocation2 + $0x510] sm:$0xff]  }
  0x60   :  { %2668 = vmatprep.subr.bf16.mxu1 %v2931_v40  ;;  %v2984_v40 = vld [vmem:[#allocation2 + $0x440] sm:$0xff]  }
  0x62   :  { %2647 = vmatpush3.bf16.msra.mxu0 %v2932_v41  ;;  %v2982_v41 = vld [vmem:[#allocation2 + $0x3b8] sm:$0xff]  }
  0x63   :  { %2648 = vmatprep.subr.bf16.mxu0 %v2934_v43  ;;  %2669 = vmatpush3.bf16.msra.mxu1 %v2933_v42  ;;  %v114_v42 = vcombine.high %v106_v38, %v106_v38  ;;  %v113_v43 = vrot.slane %v99_v39, %v3157_v35  ;;  %v3029_v39 = vld [vmem:[#allocation2 + $0x558] sm:$0xff]  }
  0x64   :  { %2670 = vmatprep.subr.bf16.mxu1 %v2935_v44  ;;  %v2985_v44 = vld [vmem:[#allocation2 + $0x4c0] sm:$0xff]  }
  0x66   :  { %2649 = vmatpush3.bf16.msra.mxu0 %v2936_v45  ;;  %v186_v45 = vpack.c.bf16 %v106_v38, %v106_v38  ;;  %v3028_v38 = vld [vmem:[#allocation2 + $0x590] sm:$0xff]  }
  0x67   :  { %2650 = vmatprep.subr.bf16.mxu0 %v2938_v47  ;;  %2671 = vmatpush3.bf16.msra.mxu1 %v2937_v46  ;;  %v2986_v46 = vld [vmem:[#allocation2 + $0x400] sm:$0xff]   ;;  %v187_v47 = vpack.c.bf16 %v114_v42, %v114_v42  ;;  %v3032_v42 = vld [vmem:[#allocation2 + $0x598] sm:$0xff]  }
  0x68   :  { %2672 = vmatprep.subr.bf16.mxu1 %v2939_v48  ;;  %v115_v48 = vcombine.high %v113_v43, %v113_v43 }
  0x6a   :  { %2651 = vmatpush3.bf16.msra.mxu0 %v2940_v49  ;;  %v2987_v49 = vld [vmem:[#allocation2 + $0x480] sm:$0xff]  }
  0x6b   :  { %2652 = vmatprep.subr.bf16.mxu0 %v2942_v51  ;;  %2673 = vmatpush3.bf16.msra.mxu1 %v2941_v50  ;;  %v188_v50 = vpack.c.bf16 %v113_v43, %v113_v43  ;;  %v2988_v51 = vld [vmem:[#allocation2 + $0x448] sm:$0xff]   ;;  %v3033_v43 = vld [vmem:[#allocation2 + $0x560] sm:$0xff]  }
  0x6c   :  { %2674 = vmatprep.subr.bf16.mxu1 %v2943_v52  ;;  %v189_v52 = vpack.c.bf16 %v115_v48, %v115_v48  ;;  %v3038_v48 = vld [vmem:[#allocation2 + $0x5e8] sm:$0xff]  }
  0x6e   :  { %2653 = vmatpush3.bf16.msra.mxu0 %v2944_v53  ;;  %v2989_v53 = vld [vmem:[#allocation2 + $0x4c8] sm:$0xff]  }
  0x6f   :  { %2654 = vmatprep.subr.bf16.mxu0 %v2946_v55  ;;  %2675 = vmatpush3.bf16.msra.mxu1 %v2945_v54  ;;  %v2990_v54 = vld [vmem:[#allocation2 + $0x408] sm:$0xff]  }
  0x70   :  { %2676 = vmatprep.subr.bf16.mxu1 %v2947_v56  ;;  %v2991_v55 = vld [vmem:[#allocation2 + $0x488] sm:$0xff]   ;;  %v2992_v56 = vld [vmem:[#allocation2 + $0x450] sm:$0xff]  }
  0x72   :  { %2655 = vmatpush3.bf16.msra.mxu0 %v2948_v57  ;;  %v2993_v57 = vld [vmem:[#allocation2 + $0x4d0] sm:$0xff]  }
  0x73   :  { %2684 = vmatprep.subr.bf16.mxu0 %v2951_v62  ;;  %2677 = vmatpush3.bf16.msra.mxu1 %v2949_v59  ;;  %v2995_v59 = vld [vmem:[#allocation2 + $0x490] sm:$0xff]   ;;  %v2998_v62 = vld [vmem:[#allocation2 + $0x418] sm:$0xff]  }
  0x74   :  { %2706 = vmatprep.subr.bf16.mxu1 %v2952_v1  ;;  %v3001_v1 = vld [vmem:[#allocation2 + $0x4e0] sm:$0xff]  }
  0x75   :  { %1934 = vmatmul.mubr.bf16.vlgmr.msra.gmra.mrb[8].mxu0 %v182_v2  ;;  %v3002_v2 = vld [vmem:[#allocation2 + $0x420] sm:$0xff]  }
  0x76   :  { %2685 = vmatpush3.bf16.msra.mxu0 %v2953_v3  ;;  %1974 = vmatmul.mubr.bf16.vlgmr.msra.gmra.mrb[8].mxu1 %v184_v7  ;;  %v3003_v3 = vld [vmem:[#allocation2 + $0x4a0] sm:$0xff]   ;;  %v3007_v7 = vld [vmem:[#allocation2 + $0x4a8] sm:$0xff]  }
  0x77   :  { %2686 = vmatprep.subr.bf16.mxu0 %v2955_v8  ;;  %2707 = vmatpush3.bf16.msra.mxu1 %v2954_v6  ;;  %v3006_v6 = vld [vmem:[#allocation2 + $0x428] sm:$0xff]   ;;  %v3008_v8 = vld [vmem:[#allocation2 + $0x470] sm:$0xff]  }
  0x78   :  { %2708 = vmatprep.subr.bf16.mxu1 %v2956_v10  ;;  %2013 = vmatprep.mubr.bf16.mxu0 %v187_v47  ;;  %v3010_v10 = vld [vmem:[#allocation2 + $0x430] sm:$0xff]   ;;  %v3037_v47 = vld [vmem:[#allocation2 + $0x568] sm:$0xff]  }
  0x79   :  { %2053 = vmatprep.mubr.bf16.mxu1 %v189_v52  ;;  %v3042_v52 = vld [vmem:[#allocation2 + $0x5f0] sm:$0xff]  }
  0x7a   :  { %2687 = vmatpush3.bf16.msra.mxu0 %v2957_v11  ;;  %v3011_v11 = vld [vmem:[#allocation2 + $0x4b0] sm:$0xff]  }
  0x7b   :  { %2688 = vmatprep.subr.bf16.mxu0 %v2959_v13  ;;  %2709 = vmatpush3.bf16.msra.mxu1 %v2958_v12  ;;  %v3012_v12 = vld [vmem:[#allocation2 + $0x478] sm:$0xff]  }
  0x7c   :  { %2710 = vmatprep.subr.bf16.mxu1 %v2960_v14  ;;  %v3013_v13 = vld [vmem:[#allocation2 + $0x4f8] sm:$0xff]  }
  0x7d   :  { %v3014_v14 = vld [vmem:[#allocation2 + $0x438] sm:$0xff]  }
  0x7e   :  { %2689 = vmatpush3.bf16.msra.mxu0 %v2961_v15  ;;  %v40_v15 = vld [vmem:[%s3231_s0 + $0x20] sm:$0xff] }
  0x7f   :  { %2690 = vmatprep.subr.bf16.mxu0 %v2963_v17  ;;  %2711 = vmatpush3.bf16.msra.mxu1 %v2962_v16  ;;  %v3015_v16 = vld [vmem:[#allocation2 + $0x4b8] sm:$0xff]   ;;  %v123_v17 = vrot.slane %v40_v15, %v3157_v35 }
  0x80   :  { %2712 = vmatprep.subr.bf16.mxu1 %v2964_v18  ;;  %v116_v18 = vcombine.high %v40_v15, %v40_v15 }
  0x82   :  { %2691 = vmatpush3.bf16.msra.mxu0 %v2965_v19  ;;  %v3017_v19 = vld [vmem:[#allocation2 + $0x540] sm:$0xff]  }
  0x83   :  { %2692 = vmatprep.subr.bf16.mxu0 %v2967_v21  ;;  %2713 = vmatpush3.bf16.msra.mxu1 %v2966_v20  ;;  %v131_v20 = vcombine.high %v123_v17, %v123_v17  ;;  %v130_v21 = vrot.slane %v116_v18, %v3157_v35  ;;  %v3112_v18 = vmov 0.0  }
  0x84   :  { %2714 = vmatprep.subr.bf16.mxu1 %v2968_v22  ;;  %v3018_v22 = vld [vmem:[#allocation2 + $0x5c0] sm:$0xff]  }
  0x86   :  { %2693 = vmatpush3.bf16.msra.mxu0 %v2969_v23  ;;  %v190_v23 = vpack.c.bf16 %v123_v17, %v123_v17  ;;  %v3050_v17 = vld [vmem:[%s3234_s3] sm:$0xff]  }
  0x87   :  { %2694 = vmatprep.subr.bf16.mxu0 %v2971_v25  ;;  %2715 = vmatpush3.bf16.msra.mxu1 %v2970_v24  ;;  %v3019_v24 = vld [vmem:[#allocation2 + $0x500] sm:$0xff]   ;;  %v191_v25 = vpack.c.bf16 %v131_v20, %v131_v20 }
  0x88   :  { %2716 = vmatprep.subr.bf16.mxu1 %v2972_v26  ;;  %v132_v26 = vcombine.high %v130_v21, %v130_v21  ;;  %v3052_v20 = vld [vmem:[%s3234_s3 + $0x10] sm:$0xff]  }
  0x8a   :  { %2695 = vmatpush3.bf16.msra.mxu0 %v2973_v27  ;;  %v3020_v27 = vld [vmem:[#allocation2 + $0x580] sm:$0xff]  }
  0x8b   :  { %2696 = vmatprep.subr.bf16.mxu0 %v2975_v29  ;;  %2717 = vmatpush3.bf16.msra.mxu1 %v2974_v28  ;;  %v192_v28 = vpack.c.bf16 %v130_v21, %v130_v21  ;;  %v3021_v29 = vld [vmem:[#allocation2 + $0x548] sm:$0xff]  }
  0x8c   :  { %2718 = vmatprep.subr.bf16.mxu1 %v2976_v30  ;;  %v193_v30 = vpack.c.bf16 %v132_v26, %v132_v26 }
  0x8e   :  { %2697 = vmatpush3.bf16.msra.mxu0 %v2977_v31  ;;  %v3022_v31 = vld [vmem:[#allocation2 + $0x5c8] sm:$0xff]  }
  0x8f   :  { %2698 = vmatprep.subr.bf16.mxu0 %v2979_v33  ;;  %2719 = vmatpush3.bf16.msra.mxu1 %v2978_v32  ;;  %v3023_v32 = vld [vmem:[#allocation2 + $0x508] sm:$0xff]  }
  0x90   :  { %2720 = vmatprep.subr.bf16.mxu1 %v2980_v34  ;;  %v3024_v33 = vld [vmem:[#allocation2 + $0x588] sm:$0xff]   ;;  %v3025_v34 = vld [vmem:[#allocation2 + $0x550] sm:$0xff]  }
  0x92   :  { %2699 = vmatpush3.bf16.msra.mxu0 %v2981_v36  ;;  %v3026_v36 = vld [vmem:[#allocation2 + $0x5d0] sm:$0xff]  }
  0x93   :  { %2728 = vmatprep.subr.bf16.mxu0 %v2984_v40  ;;  %2721 = vmatpush3.bf16.msra.mxu1 %v2982_v41  ;;  %v3030_v40 = vld [vmem:[#allocation2 + $0x5d8] sm:$0xff]  }
  0x94   :  { %2750 = vmatprep.subr.bf16.mxu1 %v2985_v44  ;;  %v3031_v41 = vld [vmem:[#allocation2 + $0x518] sm:$0xff]   ;;  %v3034_v44 = vld [vmem:[#allocation2 + $0x5e0] sm:$0xff]  }
  0x95   :  { %2014 = vmatmul.mubr.bf16.vlgmr.msra.gmra.mrb[12].mxu0 %v186_v45  ;;  %v3035_v45 = vld [vmem:[#allocation2 + $0x520] sm:$0xff]  }
  0x96   :  { %2729 = vmatpush3.bf16.msra.mxu0 %v2986_v46  ;;  %2054 = vmatmul.mubr.bf16.vlgmr.msra.gmra.mrb[12].mxu1 %v188_v50  ;;  %v3036_v46 = vld [vmem:[#allocation2 + $0x5a0] sm:$0xff]   ;;  %v3040_v50 = vld [vmem:[#allocation2 + $0x5a8] sm:$0xff]  }
  0x97   :  { %2730 = vmatprep.subr.bf16.mxu0 %v2988_v51  ;;  %2751 = vmatpush3.bf16.msra.mxu1 %v2987_v49  ;;  %v3039_v49 = vld [vmem:[#allocation2 + $0x528] sm:$0xff]   ;;  %v3041_v51 = vld [vmem:[#allocation2 + $0x570] sm:$0xff]  }
  0x98   :  { %2752 = vmatprep.subr.bf16.mxu1 %v2989_v53  ;;  %2093 = vmatprep.mubr.bf16.mxu0 %v191_v25  ;;  %v3043_v53 = vld [vmem:[#allocation2 + $0x530] sm:$0xff]  }
  0x99   :  { %2133 = vmatprep.mubr.bf16.mxu1 %v193_v30 }
  0x9a   :  { %2731 = vmatpush3.bf16.msra.mxu0 %v2990_v54  ;;  %v3044_v54 = vld [vmem:[#allocation2 + $0x5b0] sm:$0xff]  }
  0x9b   :  { %2732 = vmatprep.subr.bf16.mxu0 %v2992_v56  ;;  %2753 = vmatpush3.bf16.msra.mxu1 %v2991_v55  ;;  %v3045_v55 = vld [vmem:[#allocation2 + $0x578] sm:$0xff]  }
  0x9c   :  { %2754 = vmatprep.subr.bf16.mxu1 %v2993_v57  ;;  %v3046_v56 = vld [vmem:[#allocation2 + $0x5f8] sm:$0xff]  }
  0x9d   :  { %v3047_v57 = vld [vmem:[#allocation2 + $0x538] sm:$0xff]  }
  0x9e   :  { %2733 = vmatpush3.bf16.msra.mxu0 %v2994_v58  ;;  %v41_v58 = vld [vmem:[%s3231_s0 + $0x28] sm:$0xff] }
  0x9f   :  { %2734 = vmatprep.subr.bf16.mxu0 %v2996_v60  ;;  %2755 = vmatpush3.bf16.msra.mxu1 %v2995_v59  ;;  %v3048_v59 = vld [vmem:[#allocation2 + $0x5b8] sm:$0xff]   ;;  %v140_v60 = vrot.slane %v41_v58, %v3157_v35 }
  0xa0   :  { %2756 = vmatprep.subr.bf16.mxu1 %v2997_v61  ;;  %v133_v61 = vcombine.high %v41_v58, %v41_v58 }
  0xa2   :  { %2735 = vmatpush3.bf16.msra.mxu0 %v2998_v62  ;;  %v148_v62 = vcombine.high %v140_v60, %v140_v60 }
  0xa3   :  { %2736 = vmatprep.subr.bf16.mxu0 %v3000_v0  ;;  %2757 = vmatpush3.bf16.msra.mxu1 %v2999_v63  ;;  %v147_v63 = vrot.slane %v133_v61, %v3157_v35  ;;  %v194_v0 = vpack.c.bf16 %v140_v60, %v140_v60 }
  0xa4   :  { %2758 = vmatprep.subr.bf16.mxu1 %v3001_v1  ;;  %v195_v1 = vpack.c.bf16 %v148_v62, %v148_v62 }
  0xa6   :  { %2737 = vmatpush3.bf16.msra.mxu0 %v3002_v2  ;;  %v149_v2 = vcombine.high %v147_v63, %v147_v63 }
  0xa7   :  { %2738 = vmatprep.subr.bf16.mxu0 %v3004_v4  ;;  %2759 = vmatpush3.bf16.msra.mxu1 %v3003_v3  ;;  %v196_v3 = vpack.c.bf16 %v147_v63, %v147_v63 }
  0xa8   :  { %2760 = vmatprep.subr.bf16.mxu1 %v3005_v5  ;;  %v197_v4 = vpack.c.bf16 %v149_v2, %v149_v2 }
  0xaa   :  { %2739 = vmatpush3.bf16.msra.mxu0 %v3006_v6  ;;  %v2350_v6 = vld [vmem:[%s3233_s2] ss:$0 sm:$0xff] }
  0xab   :  { %2740 = vmatprep.subr.bf16.mxu0 %v3008_v8  ;;  %2761 = vmatpush3.bf16.msra.mxu1 %v3007_v7 }
  0xac   :  { %2762 = vmatprep.subr.bf16.mxu1 %v3009_v9 }
  0xae   :  { %2741 = vmatpush3.bf16.msra.mxu0 %v3010_v10 }
  0xaf   :  { %2742 = vmatprep.subr.bf16.mxu0 %v3012_v12  ;;  %2763 = vmatpush3.bf16.msra.mxu1 %v3011_v11 }
  0xb0   :  { %2764 = vmatprep.subr.bf16.mxu1 %v3013_v13 }
  0xb2   :  { %2743 = vmatpush3.bf16.msra.mxu0 %v3014_v14 }
  0xb3   :  { %2772 = vmatprep.subr.bf16.mxu0 %v3017_v19  ;;  %2765 = vmatpush3.bf16.msra.mxu1 %v3015_v16  ;;  %v3051_v19 = vld [vmem:[%s3234_s3 + $0x8] sm:$0xff]  }
  0xb4   :  { %2794 = vmatprep.subr.bf16.mxu1 %v3018_v22 }
  0xb5   :  { %2094 = vmatmul.mubr.bf16.vlgmr.msra.gmra.mrb[16].mxu0 %v190_v23 }
  0xb6   :  { %2773 = vmatpush3.bf16.msra.mxu0 %v3019_v24  ;;  %2134 = vmatmul.mubr.bf16.vlgmr.msra.gmra.mrb[16].mxu1 %v192_v28  ;;  %v3053_v28 = vld [vmem:[%s3234_s3 + $0x18] sm:$0xff]  }
  0xb7   :  { %2774 = vmatprep.subr.bf16.mxu0 %v3021_v29  ;;  %2795 = vmatpush3.bf16.msra.mxu1 %v3020_v27 }
  0xb8   :  { %2796 = vmatprep.subr.bf16.mxu1 %v3022_v31  ;;  %2173 = vmatprep.mubr.bf16.mxu0 %v195_v1 }
  0xb9   :  { %2213 = vmatprep.mubr.bf16.mxu1 %v197_v4 }
  0xba   :  { %2775 = vmatpush3.bf16.msra.mxu0 %v3023_v32 }
  0xbb   :  { %2776 = vmatprep.subr.bf16.mxu0 %v3025_v34  ;;  %2797 = vmatpush3.bf16.msra.mxu1 %v3024_v33  ;;  %v3054_v34 = vld [vmem:[%s3234_s3 + $0x20] sm:$0xff]  }
  0xbc   :  { %2798 = vmatprep.subr.bf16.mxu1 %v3026_v36  ;;  %v3055_v36 = vld [vmem:[%s3234_s3 + $0x28] sm:$0xff]  }
  0xbe   :  { %2777 = vmatpush3.bf16.msra.mxu0 %v3027_v37  ;;  %v3056_v37 = vld [vmem:[%s3234_s3 + $0x30] sm:$0xff]  }
  0xbf   :  { %2778 = vmatprep.subr.bf16.mxu0 %v3029_v39  ;;  %2799 = vmatpush3.bf16.msra.mxu1 %v3028_v38  ;;  %v3057_v38 = vld [vmem:[%s3234_s3 + $0x38] sm:$0xff]  }
  0xc0   :  { %2800 = vmatprep.subr.bf16.mxu1 %v3030_v40 }
  0xc2   :  { %2779 = vmatpush3.bf16.msra.mxu0 %v3031_v41 }
  0xc3   :  { %2780 = vmatprep.subr.bf16.mxu0 %v3033_v43  ;;  %2801 = vmatpush3.bf16.msra.mxu1 %v3032_v42 }
  0xc4   :  { %2802 = vmatprep.subr.bf16.mxu1 %v3034_v44 }
  0xc6   :  { %2781 = vmatpush3.bf16.msra.mxu0 %v3035_v45 }
  0xc7   :  { %2782 = vmatprep.subr.bf16.mxu0 %v3037_v47  ;;  %2803 = vmatpush3.bf16.msra.mxu1 %v3036_v46 }
  0xc8   :  { %2804 = vmatprep.subr.bf16.mxu1 %v3038_v48 }
  0xca   :  { %2783 = vmatpush3.bf16.msra.mxu0 %v3039_v49 }
  0xcb   :  { %2784 = vmatprep.subr.bf16.mxu0 %v3041_v51  ;;  %2805 = vmatpush3.bf16.msra.mxu1 %v3040_v50 }
  0xcc   :  { %2806 = vmatprep.subr.bf16.mxu1 %v3042_v52 }
  0xce   :  { %2785 = vmatpush3.bf16.msra.mxu0 %v3043_v53 }
  0xcf   :  { %2786 = vmatprep.subr.bf16.mxu0 %v3045_v55  ;;  %2807 = vmatpush3.bf16.msra.mxu1 %v3044_v54 }
  0xd0   :  { %2808 = vmatprep.subr.bf16.mxu1 %v3046_v56 }
  0xd2   :  { %2787 = vmatpush3.bf16.msra.mxu0 %v3047_v57 }
  0xd3   :  { %2809 = vmatpush3.bf16.msra.mxu1 %v3048_v59  ;;  %2825 = vmatprep.subr.bf16.mxu0 %v3112_v18 }
  0xd5   :  { %2174 = vmatmul.mubr.bf16.vlgmr.msra.gmra.mrb[20].mxu0 %v194_v0 }
  0xd6   :  { %2214 = vmatmul.mubr.bf16.vlgmr.msra.gmra.mrb[20].mxu1 %v196_v3  ;;  %2826 = vmatpush3.bf16.msra.mxu0 %v3050_v17 }
  0xd7   :  { %2827 = vmatprep.subr.bf16.mxu0 %v3112_v18  ;;  %2841 = vmatprep.mubr.msk.bf16.mxu0 %vm3113_vm0, %v3112_v18 }
  0xda   :  { %2828 = vmatpush3.bf16.msra.mxu0 %v3051_v19 }
  0xdb   :  { %2829 = vmatprep.subr.bf16.mxu0 %v3112_v18 }
  0xde   :  { %2830 = vmatpush3.bf16.msra.mxu0 %v3052_v20 }
  0xdf   :  { %2831 = vmatprep.subr.bf16.mxu0 %v3112_v18 }
  0xe2   :  { %2832 = vmatpush3.bf16.msra.mxu0 %v3053_v28 }
  0xe3   :  { %2833 = vmatprep.subr.bf16.mxu0 %v3112_v18 }
  0xe6   :  { %2834 = vmatpush3.bf16.msra.mxu0 %v3054_v34 }
  0xe7   :  { %2835 = vmatprep.subr.bf16.mxu0 %v3112_v18 }
  0xea   :  { %2836 = vmatpush3.bf16.msra.mxu0 %v3055_v36 }
  0xeb   :  { %2837 = vmatprep.subr.bf16.mxu0 %v3112_v18 }
  0xee   :  { %2838 = vmatpush3.bf16.msra.mxu0 %v3056_v37 }
  0xef   :  { %2839 = vmatprep.subr.bf16.mxu0 %v3112_v18 }
  0xf2   :  { %2840 = vmatpush3.bf16.msra.mxu0 %v3057_v38 }
 0x108   :  { %v2568_v5 = vpop.f32.mrb[0].mxu0 }
 0x109   :  { %v2569_v7 = vpop.f32.mrb[1].mxu0  ;;  %v2590_v8 = vpop.f32.mrb[0].mxu1 }
 0x10a   :  { %v2570_v35 = vadd.f32 %v2569_v7, %v2568_v5  ;;  %v2571_v9 = vpop.f32.mrb[2].mxu0  ;;  %v2591_v10 = vpop.f32.mrb[1].mxu1 }
 0x10b   :  { %v2572_v11 = vpop.f32.mrb[3].mxu0  ;;  %v2592_v13 = vadd.f32 %v2591_v10, %v2590_v8  ;;  %v2593_v14 = vpop.f32.mrb[2].mxu1 }
 0x10c   :  { %v1776_v12 = vadd.f32 %v2570_v35, %v2350_v6  ;;  %v2594_v15 = vpop.f32.mrb[3].mxu1 }
 0x10e   :  { %v1816_v16 = vadd.f32 %v2592_v13, %v1776_v12 }
 0x128   :  { %v2612_v21 = vpop.f32.mrb[4].mxu0 }
 0x129   :  { %v2613_v22 = vpop.f32.mrb[5].mxu0  ;;  %v2634_v23 = vpop.f32.mrb[4].mxu1 }
 0x12a   :  { %v2614_v24 = vadd.f32 %v2613_v22, %v2612_v21  ;;  %v2615_v25 = vpop.f32.mrb[6].mxu0  ;;  %v2635_v26 = vpop.f32.mrb[5].mxu1 }
 0x12b   :  { %v2616_v27 = vpop.f32.mrb[7].mxu0  ;;  %v2636_v30 = vadd.f32 %v2635_v26, %v2634_v23  ;;  %v2637_v31 = vpop.f32.mrb[6].mxu1 }
 0x12c   :  { %v1856_v29 = vadd.f32 %v2614_v24, %v1816_v16  ;;  %v2638_v32 = vpop.f32.mrb[7].mxu1  ;;  %v2543_v24 = vld [vmem:[%s3235_s4] ss:$0 sm:$0xff] }
 0x12e   :  { %v1896_v33 = vadd.f32 %v2636_v30, %v1856_v29 }
 0x148   :  { %v2656_v39 = vpop.f32.mrb[8].mxu0 }
 0x149   :  { %v2657_v40 = vpop.f32.mrb[9].mxu0  ;;  %v2678_v41 = vpop.f32.mrb[8].mxu1 }
 0x14a   :  { %v2658_v42 = vadd.f32 %v2657_v40, %v2656_v39  ;;  %v2659_v43 = vpop.f32.mrb[10].mxu0  ;;  %v2679_v44 = vpop.f32.mrb[9].mxu1 }
 0x14b   :  { %v2660_v45 = vpop.f32.mrb[11].mxu0  ;;  %v2680_v47 = vadd.f32 %v2679_v44, %v2678_v41  ;;  %v2681_v48 = vpop.f32.mrb[10].mxu1 }
 0x14c   :  { %v1936_v46 = vadd.f32 %v2658_v42, %v1896_v33  ;;  %v2682_v49 = vpop.f32.mrb[11].mxu1 }
 0x14e   :  { %v1976_v50 = vadd.f32 %v2680_v47, %v1936_v46 }
 0x168   :  { %v2700_v51 = vpop.f32.mrb[12].mxu0 }
 0x169   :  { %v2701_v52 = vpop.f32.mrb[13].mxu0  ;;  %v2722_v53 = vpop.f32.mrb[12].mxu1 }
 0x16a   :  { %v2702_v54 = vadd.f32 %v2701_v52, %v2700_v51  ;;  %v2703_v55 = vpop.f32.mrb[14].mxu0  ;;  %v2723_v56 = vpop.f32.mrb[13].mxu1 }
 0x16b   :  { %v2704_v57 = vpop.f32.mrb[15].mxu0  ;;  %v2724_v59 = vadd.f32 %v2723_v56, %v2722_v53  ;;  %v2725_v60 = vpop.f32.mrb[14].mxu1 }
 0x16c   :  { %v2016_v58 = vadd.f32 %v2702_v54, %v1976_v50  ;;  %v2726_v61 = vpop.f32.mrb[15].mxu1 }
 0x16e   :  { %v2056_v62 = vadd.f32 %v2724_v59, %v2016_v58 }
 0x188   :  { %v2744_v63 = vpop.f32.mrb[16].mxu0 }
 0x189   :  { %v2745_v0 = vpop.f32.mrb[17].mxu0  ;;  %v2766_v1 = vpop.f32.mrb[16].mxu1 }
 0x18a   :  { %v2746_v2 = vadd.f32 %v2745_v0, %v2744_v63  ;;  %v2747_v3 = vpop.f32.mrb[18].mxu0  ;;  %v2767_v4 = vpop.f32.mrb[17].mxu1 }
 0x18b   :  { %v2748_v5 = vpop.f32.mrb[19].mxu0  ;;  %v2768_v7 = vadd.f32 %v2767_v4, %v2766_v1  ;;  %v2769_v8 = vpop.f32.mrb[18].mxu1 }
 0x18c   :  { %v2096_v6 = vadd.f32 %v2746_v2, %v2056_v62  ;;  %v2770_v35 = vpop.f32.mrb[19].mxu1 }
 0x18e   :  { %v2136_v9 = vadd.f32 %v2768_v7, %v2096_v6 }
 0x1a8   :  { %v2788_v10 = vpop.f32.mrb[20].mxu0 }
 0x1a9   :  { %v2789_v11 = vpop.f32.mrb[21].mxu0  ;;  %v2810_v12 = vpop.f32.mrb[20].mxu1 }
 0x1aa   :  { %v2790_v13 = vadd.f32 %v2789_v11, %v2788_v10  ;;  %v2791_v14 = vpop.f32.mrb[22].mxu0  ;;  %v2811_v15 = vpop.f32.mrb[21].mxu1 }
 0x1ab   :  { %v2792_v16 = vpop.f32.mrb[23].mxu0  ;;  %v2812_v18 = vadd.f32 %v2811_v15, %v2810_v12  ;;  %v2813_v19 = vpop.f32.mrb[22].mxu1 }
 0x1ac   :  { %v2176_v17 = vadd.f32 %v2790_v13, %v2136_v9  ;;  %v2814_v20 = vpop.f32.mrb[23].mxu1 }
 0x1ae   :  { %v2216_v21 = vadd.f32 %v2812_v18, %v2176_v17 }
 0x1b0   :  { %3058 = vtanh.f32 %v2216_v21 }
 0x1ba   :  { %v3059_v22 = vpop.eup %3058 }
 0x1bb   :  { %v2222_v23 = vpack.c.bf16 %v3059_v22, %v3059_v22 }
 0x1bd   :  { %2842 = vmatmul.mubr.bf16.vlgmr.msra.gmra.mrb[24].mxu0 %v2222_v23 }
 0x290   :  { %v2328_v25 = vpop.f32.mrb[24].mxu0 }
 0x291   :  { %v2329_v26 = vadd.f32 %v2543_v24, %v2328_v25  ;;  %v2843_v27 = vpop.f32.mrb[25].mxu0 }
 0x292   :  { %v2331_v28 = vpop.f32.mrb[26].mxu0 }
 0x293   :  { %2334 = vst [vmem:[#allocation5] sm:$0x3] %v2329_v26  ;;  %v2844_v29 = vpop.f32.mrb[27].mxu0 }
 0x294   :  { %3093 = shalt.err (!%p3090_p12)
}
 0x295   :  { %s3094_s4 = scalar_lea.hbm %s3236_s5, 32 }
 0x296   :  { %p3095_p13 = scmp.ne.s32.totalorder %s3236_s5, %s3094_s4  ;;  %p3098_p0 = scmp.lt.u32.totalorder %s3094_s4, %s3236_s5 }
 0x298   :  { %p3100_p1 = pnand %p3098_p0, %p3095_p13 }
 0x29a   :  { %3103 = shalt.err (!%p3100_p1)
}
 0x29b   :  { %2344 = dma.vmem_to_hbm [thread:$0]  %s2342_s10, 32, %s3236_s5, [#allocation4]  }
 0x29c   :  { %3106 = dma.done.wait [#allocation4], 32  }
 0x29d   :  { %3107 = vsyncadd [#allocation4], 4294967264 }
 0x29e   :  { %2348 = vsyncpa [#allocation3], 1 }
 0x29f   :  { %2349 = vsyncpa [#allocation4], 1 }

</bundles_post_ra>
